<compile_context>
chip_gen: v6e
topology: v6e:2x2x1
jax: 0.10.0
libtpu: 0.0.40
codegen_flags: <defaults>
</compile_context>

<pallas_src>
import functools

import jax
import jax.numpy as jnp
from jax import lax
from jax.experimental import pallas as pl
from jax.experimental.pallas import tpu as pltpu

_SMOOTH = 1.0


def _dice_batch_kernel(x_ref, t_ref, out_ref):
    """Batch-blocked path: block = (Bn, S, dsub) whole samples, single step."""
    x = x_ref[...].astype(jnp.float32)
    t = t_ref[...].astype(jnp.float32)
    inter = jnp.sum(jnp.sum(x * t, axis=-1, keepdims=True), axis=-2, keepdims=True)
    denom = jnp.sum(jnp.sum(x + t, axis=-1, keepdims=True), axis=-2, keepdims=True)
    out_ref[...] = 2.0 * (inter + _SMOOTH) / (denom + _SMOOTH)


def _dice_tiled_kernel(x_ref, t_ref, out_ref, inter_acc, sum_acc, *, rem):
    """Lane-tiled path: one sample per batch step, (S, tile) f32 accumulators."""
    k = pl.program_id(1)
    last = pl.num_programs(1) - 1

    @pl.when(k == 0)
    def _():
        inter_acc[...] = jnp.zeros_like(inter_acc)
        sum_acc[...] = jnp.zeros_like(sum_acc)

    x = x_ref[...].astype(jnp.float32)
    t = t_ref[...].astype(jnp.float32)

    def _accum(xv, tv):
        inter_acc[...] += xv * tv
        sum_acc[...] += xv + tv

    if rem:
        # Only the last lane tile is partial: every other step is unmasked
        # (no per-step iota/compare/select VALU cost).
        @pl.when(k != last)
        def _():
            _accum(x, t)

        @pl.when(k == last)
        def _():
            lane = lax.broadcasted_iota(jnp.int32, x.shape, 1)
            valid = lane < rem
            _accum(jnp.where(valid, x, 0.0), jnp.where(valid, t, 0.0))
    else:
        _accum(x, t)

    @pl.when(k == last)
    def _():
        inter = jnp.sum(jnp.sum(inter_acc[...], axis=-1, keepdims=True),
                        axis=-2, keepdims=True)
        denom = jnp.sum(jnp.sum(sum_acc[...], axis=-1, keepdims=True),
                        axis=-2, keepdims=True)
        out_ref[...] = 2.0 * (inter + _SMOOTH) / (denom + _SMOOTH)


def _round_up(v, m):
    return -(-v // m) * m


def _native_pack(dtype):
    # Native sublane packing of one vreg: f32 -> 8, bf16/fp16 -> 16, int8 -> 32.
    return {1: 32, 2: 16, 4: 8}.get(jnp.dtype(dtype).itemsize, 8)


def _largest_divisor_leq(n, cap):
    cap = max(1, min(n, cap))
    for d in range(cap, 0, -1):
        if n % d == 0:
            return d
    return 1


def dice_loss(inp, tgt, *, max_block_elems=512 * 1024):
    """Pallas DiceLoss forward. inp/tgt: any shape with leading batch dim N."""
    N = tgt.shape[0]
    x = inp.reshape(N, -1)
    t = tgt.reshape(N, -1)
    D = x.shape[1]

    # ---- sublane packing factor S (dtype-aware), zero-padding D if needed ----
    s_native = max(_native_pack(x.dtype), _native_pack(t.dtype))
    S = 0
    s = s_native
    while s >= 8:
        if D % s == 0:
            S = s
            break
        s //= 2
    if S == 0:
        # D not a multiple of 8: zero-pad (zeros are neutral for the dice sums)
        # so every vreg / VMEM tile uses full sublane packing. One HBM copy.
        S = s_native
        d_pad = _round_up(D, S)
        x = jnp.pad(x, ((0, 0), (0, d_pad - D)))
        t = jnp.pad(t, ((0, 0), (0, d_pad - D)))
        D = d_pad
    dsub = D // S
    x = x.reshape(N, S, dsub)
    t = t.reshape(N, S, dsub)

    lanes_pad = _round_up(dsub, 128)       # physical lane footprint of one row
    sample_elems = S * lanes_pad           # per-sample, per-array elements

    # Decide between the batch-blocked single-tile path and the lane-tiled
    # multi-step reduction path.
    use_batch_path = sample_elems <= max_block_elems
    tile = 0
    if not use_batch_path:
        tile = max(128, (max_block_elems // S) // 128 * 128)
        if dsub <= tile:
            use_batch_path = True          # whole sample fits one lane tile

    if use_batch_path:
        # -------- path 1: batch-blocked, single lane tile, no accumulators ----
        bn_cap = max(1, max_block_elems // sample_elems)
        if N > 1:
            # Keep >= 2 batch blocks so both v7x TensorCores get work
            # (no-op cost-wise on v5e/v6e: one extra ~0.35 us grid step).
            bn_cap = min(bn_cap, max(1, N // 2))
        Bn = _largest_divisor_leq(N, bn_cap)

        per_sample = pl.pallas_call(
            _dice_batch_kernel,
            out_shape=jax.ShapeDtypeStruct((N, 1, 1), jnp.float32),
            grid_spec=pltpu.PrefetchScalarGridSpec(
                num_scalar_prefetch=0,
                grid=(N // Bn,),
                in_specs=[
                    pl.BlockSpec((Bn, S, dsub), lambda n: (n, 0, 0)),
                    pl.BlockSpec((Bn, S, dsub), lambda n: (n, 0, 0)),
                ],
                out_specs=pl.BlockSpec((Bn, 1, 1), lambda n: (n, 0, 0)),
            ),
            compiler_params=pltpu.CompilerParams(
                dimension_semantics=("parallel",),
                vmem_limit_bytes=32 * 1024 * 1024,
            ),
        )(x, t)
    else:
        # -------- path 2: one sample per batch step, lane-tiled reduction -----
        num_tiles = pl.cdiv(dsub, tile)
        rem = dsub % tile
        kernel = functools.partial(_dice_tiled_kernel, rem=rem)

        per_sample = pl.pallas_call(
            kernel,
            out_shape=jax.ShapeDtypeStruct((N, 1, 1), jnp.float32),
            grid_spec=pltpu.PrefetchScalarGridSpec(
                num_scalar_prefetch=0,
                grid=(N, num_tiles),
                in_specs=[
                    pl.BlockSpec((None, S, tile), lambda n, k: (n, 0, k)),
                    pl.BlockSpec((None, S, tile), lambda n, k: (n, 0, k)),
                ],
                out_specs=pl.BlockSpec((None, 1, 1), lambda n, k: (n, 0, 0)),
                scratch_shapes=[
                    pltpu.VMEM((S, tile), jnp.float32),
                    pltpu.VMEM((S, tile), jnp.float32),
                ],
            ),
            compiler_params=pltpu.CompilerParams(
                dimension_semantics=("parallel", "arbitrary"),
                vmem_limit_bytes=32 * 1024 * 1024,
            ),
        )(x, t)

    # Final mean + negation over the N per-sample dice ratios (tiny; in JAX).
    return -(jnp.sum(per_sample[:, 0, 0]) / N)


def _dice_loss_ref(inp, tgt):
    N = tgt.shape[0]
    x = inp.reshape(N, -1).astype(jnp.float32)
    t = tgt.reshape(N, -1).astype(jnp.float32)
    smooth = 1.0
    inter = jnp.sum(x * t, axis=1)
    loss = 2.0 * (inter + smooth) / (jnp.sum(x, 1) + jnp.sum(t, 1) + smooth)
    return -(jnp.sum(loss) / N)


if __name__ == "__main__":
    key = jax.random.PRNGKey(0)
    k1, k2, k3, k4, k5, k6, k7, k8 = jax.random.split(key, 8)

    # 1) NCHW-style inputs: batch=2, channels=4, spatial=16x16 -> D = 1024.
    #    Exercises the batch-blocked single-tile path (S = 8).
    inp = jax.random.uniform(k1, (2, 4, 16, 16), dtype=jnp.float32)
    tgt = (jax.random.uniform(k2, (2, 4, 16, 16)) > 0.5).astype(jnp.float32)
    out = jax.block_until_ready(dice_loss(inp, tgt))
    ref = jax.block_until_ready(_dice_loss_ref(inp, tgt))
    assert jnp.allclose(out, ref, rtol=1e-5, atol=1e-5), (out, ref)

    # 2) Ragged feature axis (D = 1200) with a forced tiny block budget:
    #    exercises the multi-tile reduction path and last-tile masking.
    inp2 = jax.random.uniform(k3, (2, 3, 20, 20), dtype=jnp.float32)
    tgt2 = (jax.random.uniform(k4, (2, 3, 20, 20)) > 0.5).astype(jnp.float32)
    out2 = jax.block_until_ready(dice_loss(inp2, tgt2, max_block_elems=1024))
    ref2 = jax.block_until_ready(_dice_loss_ref(inp2, tgt2))
    assert jnp.allclose(out2, ref2, rtol=1e-5, atol=1e-5), (out2, ref2)

    # 3) Odd D (D = 245): exercises the zero-pad-to-sublane-packing path.
    inp3 = jax.random.uniform(k5, (2, 5, 7, 7), dtype=jnp.float32)
    tgt3 = (jax.random.uniform(k6, (2, 5, 7, 7)) > 0.5).astype(jnp.float32)
    out3 = jax.block_until_ready(dice_loss(inp3, tgt3))
    ref3 = jax.block_until_ready(_dice_loss_ref(inp3, tgt3))
    assert jnp.allclose(out3, ref3, rtol=1e-5, atol=1e-5), (out3, ref3)

    # 4) bf16 input (D = 2048): exercises dtype-aware sublane packing (S = 16).
    inp4 = jax.random.uniform(k7, (2, 8, 16, 16), dtype=jnp.bfloat16)
    tgt4 = (jax.random.uniform(k8, (2, 8, 16, 16)) > 0.5).astype(jnp.float32)
    out4 = jax.block_until_ready(dice_loss(inp4, tgt4))
    ref4 = jax.block_until_ready(_dice_loss_ref(inp4, tgt4))
    assert jnp.allclose(out4, ref4, rtol=1e-4, atol=1e-4), (out4, ref4)

    print("KERNEL_OK")
</pallas_src>

<mosaic_0001>
module attributes {stable_mosaic.version = 11 : i64} {
  func.func @_dice_batch_kernel(%arg0: i32, %arg1: memref<1x8x128xf32, #tpu.memory_space<vmem>>, %arg2: memref<1x8x128xf32, #tpu.memory_space<vmem>>, %arg3: memref<1x1x1xf32, #tpu.memory_space<vmem>>) attributes {dimension_semantics = [#tpu.dimension_semantics<parallel>], iteration_bounds = array<i64: 2>, scalar_prefetch = 0 : i64, scratch_operands = 0 : i64, tpu.core_type = #tpu.core_type<tc>, window_params = [{transform_indices = @transform_0, window_bounds = array<i64: 1, 8, 128>}, {transform_indices = @transform_1, window_bounds = array<i64: 1, 8, 128>}, {transform_indices = @transform_2, window_bounds = array<i64: 1, 1, 1>}]} {
    %c0 = arith.constant 0 : index
    %c0_0 = arith.constant 0 : index
    %c0_1 = arith.constant 0 : index
    %0 = vector.load %arg1[%c0, %c0_0, %c0_1] : memref<1x8x128xf32, #tpu.memory_space<vmem>>, vector<1x8x128xf32>
    %c0_2 = arith.constant 0 : index
    %c0_3 = arith.constant 0 : index
    %c0_4 = arith.constant 0 : index
    %1 = vector.load %arg2[%c0_2, %c0_3, %c0_4] : memref<1x8x128xf32, #tpu.memory_space<vmem>>, vector<1x8x128xf32>
    %2 = arith.mulf %0, %1 : vector<1x8x128xf32>
    %cst = arith.constant dense<0.000000e+00> : vector<1x8xf32>
    %3 = vector.multi_reduction <add>, %2, %cst [2] : vector<1x8x128xf32> to vector<1x8xf32>
    %4 = vector.shape_cast %3 : vector<1x8xf32> to vector<1x8x1xf32>
    %cst_5 = arith.constant dense<0.000000e+00> : vector<1x1xf32>
    %5 = vector.multi_reduction <add>, %4, %cst_5 [1] : vector<1x8x1xf32> to vector<1x1xf32>
    %6 = vector.shape_cast %5 : vector<1x1xf32> to vector<1x1x1xf32>
    %7 = arith.addf %0, %1 : vector<1x8x128xf32>
    %cst_6 = arith.constant dense<0.000000e+00> : vector<1x8xf32>
    %8 = vector.multi_reduction <add>, %7, %cst_6 [2] : vector<1x8x128xf32> to vector<1x8xf32>
    %9 = vector.shape_cast %8 : vector<1x8xf32> to vector<1x8x1xf32>
    %cst_7 = arith.constant dense<0.000000e+00> : vector<1x1xf32>
    %10 = vector.multi_reduction <add>, %9, %cst_7 [1] : vector<1x8x1xf32> to vector<1x1xf32>
    %11 = vector.shape_cast %10 : vector<1x1xf32> to vector<1x1x1xf32>
    %cst_8 = arith.constant 1.000000e+00 : f32
    %12 = vector.broadcast %cst_8 : f32 to vector<1x1x1xf32>
    %13 = arith.addf %6, %12 : vector<1x1x1xf32>
    %cst_9 = arith.constant 2.000000e+00 : f32
    %14 = vector.broadcast %cst_9 : f32 to vector<1x1x1xf32>
    %15 = arith.mulf %14, %13 : vector<1x1x1xf32>
    %cst_10 = arith.constant 1.000000e+00 : f32
    %16 = vector.broadcast %cst_10 : f32 to vector<1x1x1xf32>
    %17 = arith.addf %11, %16 : vector<1x1x1xf32>
    %18 = arith.divf %15, %17 : vector<1x1x1xf32>
    %c0_11 = arith.constant 0 : index
    %c0_12 = arith.constant 0 : index
    %c0_13 = arith.constant 0 : index
    %19 = vector.load %arg3[%c0_11, %c0_12, %c0_13] : memref<1x1x1xf32, #tpu.memory_space<vmem>>, vector<1x1x1xf32>
    tpu.vector_store %arg3[%c0_11, %c0_12, %c0_13], %18 {strides = array<i32>} : memref<1x1x1xf32, #tpu.memory_space<vmem>>, vector<1x1x1xf32>,
    return
  }
  func.func @transform_0(%arg0: i32) -> (i32, i32, i32) {
    %c0_i32 = arith.constant 0 : i32
    %c0_i32_0 = arith.constant 0 : i32
    %c0_i32_1 = arith.constant 0 : i32
    return %arg0, %c0_i32, %c0_i32_0 : i32, i32, i32
  }
  func.func @transform_1(%arg0: i32) -> (i32, i32, i32) {
    %c0_i32 = arith.constant 0 : i32
    %c0_i32_0 = arith.constant 0 : i32
    %c0_i32_1 = arith.constant 0 : i32
    return %arg0, %c0_i32, %c0_i32_0 : i32, i32, i32
  }
  func.func @transform_2(%arg0: i32) -> (i32, i32, i32) {
    %c0_i32 = arith.constant 0 : i32
    %c0_i32_0 = arith.constant 0 : i32
    %c0_i32_1 = arith.constant 0 : i32
    return %arg0, %c0_i32, %c0_i32_0 : i32, i32, i32
  }
}

</mosaic_0001>

<bundles_post_ra>
// kernel: tpu_custom_call.1
= control target key start
LH: loop header
LB: loop body
LE: loop exit
PB: predicated region body
PF: predicated region fallthrough
CT: control target
= control target key end

     0   :  { %7 = vsyncpa [#allocation3], 0  ;;  %s626_s0 = inlined_call_operand.hbm [shape: f32[2,8,128], index: 0, kind: input, shape index: {}]   ;;  %s627_s1 = inlined_call_operand.hbm [shape: f32[2,8,128], index: 1, kind: input, shape index: {}]   ;;  %s628_s2 = inlined_call_operand.vmem [shape: f32[2,1,1], index: 2, kind: output, shape index: {}]  }
   0x1   :  { %9 = vsyncpa [#allocation3 + $0x1], 0 }
   0x2   :  { %10 = vsyncpa [#allocation5], 0 }
   0x3   :  { %12 = vsyncpa [#allocation5 + $0x1], 0  ;;  %s474_s9 = smov 0   ;;  %s476_s10 = smov 0  }
   0x4   :  { %s478_s11 = smov 0   ;;  %s480_s12 = smov 0  }
   0x5 LB: > { %s493_s13 = sadd.s32 4294967295, %s455_s12   ;;  %s496_s14 = sadd.s32 1, %s455_s12   ;;  %s455_s12 = sphi %s480_s12, %s640_s12   ;;  %s451_s11 = sphi %s478_s11, %s639_s11   ;;  %s447_s10 = sphi %s476_s10, %s638_s10   ;;  %s443_s9 = sphi %s474_s9, %s637_s9  }
   0x6   : > { %s22_s15 = ssub.s32 %s455_s12, %s496_s14  ;;  %s25_s16 = sadd.s32 1, %s451_s11 }
   0x7   : > { %p23_p0 = scmp.eq.s32.totalorder %s22_s15, 0  ;;  %p32_p1 = scmp.ne.s32.totalorder %s451_s11, %s447_s10 }
   0x8   : > { %p33_p2 = scmp.eq.s32.totalorder %s455_s12, 0  ;;  %p38_p3 = scmp.ne.s32.totalorder %s447_s10, %s443_s9 }
   0x9   : > { %s506_s17 = scalar_select %p23_p0, %s451_s11, %s25_s16  }
   0xa   : > { %p34_p4 = por %p33_p2, %p32_p1  ;;  %p39_p5 = scmp.eq.s32.totalorder %s493_s13, 0 }
   0xb   : > { %p326_p6 = scmp.lt.s32.totalorder %s455_s12, 2  ;;  %s515_s19 = sand.u32 1, %s451_s11  }
   0xc   : > { %p510_p7 = por %p39_p5, %p38_p3  ;;  %s306_s20 = sshll.u32 %s515_s19, 3 }
   0xd   : > { %s307_s21 = sshll.u32 %s455_s12, 7  ;;  %s118_s25 = scalar_lea.vmem [#allocation2], %s306_s20 }
   0xe   : > { %s630_s18 = scalar_select %p510_p7, 1, 0 }
   0xf   : > { %s524_s24 = scalar_lea.hbm %s626_s0, %s307_s21  ;;  %s125_s26 = sshll.u32 %s118_s25, 4  ;;  %s528_s26 = int_to_ptr.vmem [resolvable:$true] %s125_s26 }
  0x10   : > { %p530_p8 = pnand %p326_p6, %p34_p4  ;;  %s115_s28 = scalar_lea.sflag [#allocation3], %s515_s19 }
  0x11   : > { %s361_s29 = scalar_lea.hbm %s524_s24, 128  ;;  %s366_s4 = scalar_lea.hbm %s626_s0, 256 }
  0x12   : > { %p362_p11 = scmp.ne.s32.totalorder %s524_s24, %s361_s29  ;;  %p363_p12 = pneg %p530_p8 }
  0x13   : > { %p367_p1 = scmp.lt.s32.totalorder %s524_s24, %s626_s0  ;;  %p368_p2 = scmp.lt.s32.totalorder %s366_s4, %s361_s29 }
  0x14   : > { %p364_p13 = pnand %p363_p12, %p362_p11 }
  0x15   : > { %p369_p3 = por %p368_p2, %p367_p1 }
  0x16   : > { %p365_p0 = pneg %p364_p13 }
  0x18   : > { %p370_p4 = pnand %p369_p3, %p365_p0 }
  0x1a   : > { %373 = shalt.err (!%p370_p4)
}
  0x1b   : > { %s374_s7 = scalar_lea.vmem %s528_s26, 128  ;;  %s457_s8 = smov [#allocation2]  }
  0x1c   : > { %p375_p5 = scmp.ne.s32.totalorder %s528_s26, %s374_s7  ;;  %s379_s9 = sshll.u32 %s457_s8, 4  ;;  %s380_s9 = int_to_ptr.vmem [resolvable:$false] %s379_s9 }
  0x1d   : > { %s381_s15 = scalar_lea.vmem %s380_s9, 256  ;;  %p382_p13 = scmp.lt.s32.totalorder %s528_s26, %s380_s9 }
  0x1e   : > { %p377_p6 = pnand %p375_p5, %p363_p12  ;;  %p383_p9 = scmp.lt.s32.totalorder %s381_s15, %s374_s7 }
  0x20   : > { %p378_p11 = pneg %p377_p6  ;;  %p384_p10 = por %p383_p9, %p382_p13 }
  0x22   : > { %p385_p1 = pnand %p384_p10, %p378_p11 }
  0x24   : > { %388 = shalt.err (!%p385_p1)
}
  0x25   : > { %322 = dma.hbm_to_vmem [thread:$0]  (!%p530_p8), %s524_s24, 128, %s528_s26, %s115_s28  }
  0x26   : > { %p632_p0 = scmp.lt.s32.totalorder %s455_s12, 3  ;;  %p633_p2 = scmp.ge.s32.totalorder %s455_s12, 1 }
  0x27   : > { %s574_s25 = scalar_lea.hbm %s627_s1, %s307_s21  ;;  %s136_s29 = scalar_lea.vmem [#allocation4], %s306_s20 }
  0x28   : > { %p565_p3 = pnand %p633_p2, %p632_p0  ;;  %s143_s30 = sshll.u32 %s136_s29, 4  ;;  %s144_s30 = int_to_ptr.vmem [resolvable:$true] %s143_s30 }
  0x29   : > { %s133_s24 = scalar_lea.sflag [#allocation5], %s515_s19  ;;  %s389_s26 = scalar_lea.hbm %s574_s25, 128 }
  0x2a   : > { %s634_s16 = scalar_select %p565_p3, 1, 0 }
  0x2b   : > { %p390_p9 = scmp.ne.s32.totalorder %s574_s25, %s389_s26  ;;  %s394_s3 = scalar_lea.hbm %s627_s1, 256 }
  0x2c   : > { %p395_p5 = scmp.lt.s32.totalorder %s574_s25, %s627_s1  ;;  %p396_p6 = scmp.lt.s32.totalorder %s394_s3, %s389_s26 }
  0x2d   : > { %p392_p10 = pnand %p390_p9, %p363_p12 }
  0x2e   : > { %p397_p11 = por %p396_p6, %p395_p5 }
  0x2f   : > { %p393_p4 = pneg %p392_p10 }
  0x31   : > { %p398_p13 = pnand %p397_p11, %p393_p4 }
  0x33   : > { %401 = shalt.err (!%p398_p13)
}
  0x34   : > { %s402_s20 = scalar_lea.vmem %s144_s30, 128  ;;  %s458_s19 = smov [#allocation4]  }
  0x35   : > { %p403_p1 = scmp.ne.s32.totalorder %s144_s30, %s402_s20  ;;  %s407_s5 = sshll.u32 %s458_s19, 4  ;;  %s408_s5 = int_to_ptr.vmem [resolvable:$false] %s407_s5 }
  0x36   : > { %s409_s6 = scalar_lea.vmem %s408_s5, 256  ;;  %p410_p9 = scmp.lt.s32.totalorder %s144_s30, %s408_s5 }
  0x37   : > { %p405_p0 = pnand %p403_p1, %p363_p12  ;;  %p411_p10 = scmp.lt.s32.totalorder %s409_s6, %s402_s20 }
  0x39   : > { %p406_p2 = pneg %p405_p0  ;;  %p412_p7 = por %p411_p10, %p410_p9 }
  0x3b   : > { %p413_p3 = pnand %p412_p7, %p406_p2 }
  0x3d   : > { %416 = shalt.err (!%p413_p3)
}
  0x3e   : > { %325 = dma.hbm_to_vmem [thread:$0]  (!%p530_p8), %s574_s25, 128, %s144_s30, %s133_s24  }
  0x3f   : > { %p635_p4 = scmp.ne.s32.totalorder %s634_s16, 0 }
  0x40   : > { %s154_s7 = sand.u32 (!%p635_p4), 1, %s447_s10   ;;  %p636_p12 = scmp.ne.s32.totalorder (!%p635_p4), %s630_s18, 0 }
  0x41   : > { %152 = sbr.rel (%p635_p4) target bundleno = 245 (0xf5), region = 28  ;;  %s311_s8 = sshll.u32 (!%p635_p4), %s154_s7, 3 }
  0x42   : > { %s155_s9 = scalar_lea.sflag (!%p635_p4), [#allocation3], %s154_s7  ;;  %s158_s15 = scalar_lea.vmem (!%p635_p4), [#allocation2], %s311_s8 }
  0x46   : > { %434 = dma.done.wait (%p636_p12), %s155_s9, 128  }
  0x47   : > { %436 = vsyncadd (%p636_p12), %s155_s9, 4294967168  ;;  %s164_s22 = scalar_lea.sflag [#allocation5], %s154_s7  ;;  %s167_s23 = scalar_lea.vmem [#allocation4], %s311_s8 }
  0x48   : > { %438 = dma.done.wait (%p636_p12), %s164_s22, 128  }
  0x49   : > { %440 = vsyncadd (%p636_p12), %s164_s22, 4294967168  ;;  %v194_v0 = vld [vmem:[%s158_s15] sm:$0xff]  ;;  %v195_v1 = vld [vmem:[%s167_s23] sm:$0xff]  ;;  %p191_p7 = scmp.lt.s32.totalorder %s493_s13, 1  ;;  %vm219_vm0 = vcmask 0  }
  0x4a   : > { %v205_v2 = vadd.f32 %v195_v1, %v194_v0  ;;  %v196_v3 = vmul.f32 %v195_v1, %v194_v0 }
  0x4b   : > { %s642_s13 = smov (!%p191_p7, %s493_s13), 1 }
  0x4c   : > { %206 = vadd.xlane.f32.xlu0 %v205_v2  ;;  %s193_s16 = scalar_lea.vmem %s628_s2, %s642_s13 }
  0x50   : > { %197 = vadd.xlane.f32.xlu0 %v196_v3 }
  0xd5   : > { %v207_v4 = vpop.xlane.xlu0 %206 }
  0xd6   : > { %v208_v5 = vrot.slane %v207_v4, 4 }
  0xd8   : > { %v209_v6 = vadd.f32 %v208_v5, %v207_v4 }
  0xd9   : > { %v198_v7 = vpop.xlane.xlu0 %197 }
  0xda   : > { %v210_v8 = vrot.slane %v209_v6, 2  ;;  %v199_v9 = vrot.slane %v198_v7, 4 }
  0xdc   : > { %v211_v10 = vadd.f32 %v210_v8, %v209_v6  ;;  %v200_v11 = vadd.f32 %v199_v9, %v198_v7 }
  0xde   : > { %v212_v12 = vrot.slane %v211_v10, 1  ;;  %v201_v13 = vrot.slane %v200_v11, 2 }
  0xe0   : > { %v213_v14 = vadd.f32 %v212_v12, %v211_v10  ;;  %v202_v15 = vadd.f32 %v201_v13, %v200_v11 }
  0xe2   : > { %v216_v16 = vadd.f32 1.0, %v213_v14  ;;  %v203_v17 = vrot.slane %v202_v15, 1 }
  0xe4   : > { %359 = vrcp.f32 %v216_v16  ;;  %v204_v18 = vadd.f32 %v203_v17, %v202_v15 }
  0xe6   : > { %v214_v19 = vadd.f32 1.0, %v204_v18 }
  0xe8   : > { %v215_v20 = vmul.f32 2.0, %v214_v19 }
  0xf1   : > { %v360_v21 = vpop.eup %359 }
  0xf2   : > { %v218_v22 = vmul.f32 %v360_v21, %v215_v20 }
  0xf4   : > { %220 = vst.msk [vmem:[%s193_s16] sm:$0x1] %vm219_vm0, %v218_v22 }
  0xf5 PF: > { %p15_p8 = scmp.ge.s32.totalorder %s496_s14, 4   ;;  %s637_s9 = smov %s447_s10 }
  0xf6   : > { %s638_s10 = smov %s451_s11  ;;  %s639_s11 = smov %s506_s17 }
  0xf7   : > { %s640_s12 = smov %s496_s14  ;;  %17 = sbr.rel (!%p15_p8) target bundleno = 5 (0x5), region = 81 }
  0xfc   :  { %238 = vsyncpa [#allocation3], 1 }
  0xfd   :  { %240 = vsyncpa [#allocation3 + $0x1], 1 }
  0xfe   :  { %241 = vsyncpa [#allocation5], 1 }
  0xff   :  { %243 = vsyncpa [#allocation5 + $0x1], 1 }

</bundles_post_ra>
